<compile_context>
chip_gen: v5e
topology: v5e:2x2
jax: 0.10.0
libtpu: 0.0.40
codegen_flags: <defaults>
</compile_context>

<pallas_src>
import functools

import jax
import jax.numpy as jnp
from jax.experimental import pallas as pl
from jax.experimental.pallas import tpu as pltpu


def _local_layer_kernel(h_ref, s_ref, g_ref, w_ref, b_ref, sel_ref, o_ref,
                        *, use_approx_recip):
    # h_ref  : (TB, hid)      query features (one implicit token per row)
    # s_ref  : (TB, N, hid)   key / value features
    # g_ref  : (TB, H, N)     standard Gumbel noise (host PRNG, fresh per call)
    # w_ref  : (hid, hid)     block-diagonal weight, [in, out] layout
    # b_ref  : (1, hid)       per-head biases concatenated head-major
    # sel_ref: (H, hid)       head mask: sel[i, d] = 1 iff feature d belongs to head i
    # o_ref  : (TB, hid)
    f32 = jnp.float32
    q = h_ref[...].astype(f32)                       # (TB, hid)
    s = s_ref[...].astype(f32)                       # (TB, N, hid)
    w = w_ref[...].astype(f32)                       # (hid, hid)
    b = b_ref[...].astype(f32)                       # (1, hid)
    sel = sel_ref[...].astype(f32)                   # (H, hid)

    tb, n, hid = s.shape

    # Shared per-head Linear + ReLU for Q and K, all heads in one MXU matmul each
    # (block-diagonal weight keeps heads independent).
    q_t = jnp.maximum(jnp.dot(q, w, preferred_element_type=f32) + b, 0.0)        # (TB, hid)
    # Merge the leading (non-lane) dims for a plain 2-D MXU matmul; lane dim (hid)
    # is untouched, so this reshape is layout-preserving.
    s2 = s.reshape(tb * n, hid)
    k_t = jnp.maximum(jnp.dot(s2, w, preferred_element_type=f32) + b, 0.0)
    k_t = k_t.reshape(tb, n, hid)                                                # (TB, N, hid)

    # Per-head logits: mask Q per head (VPU), then one batched MXU matmul
    # contracting over hid -> (TB, H, N).  No XLU cross-lane reduce.
    q_h = q_t[:, None, :] * sel[None, :, :]                                      # (TB, H, hid)
    logits = jnp.einsum('bhd,bnd->bhn', q_h, k_t, preferred_element_type=f32)    # (TB, H, N)

    # TODO(synk): F.dropout(p=0.1, training default) on the logits is treated as
    # identity (inference semantics); exact match would need a host-supplied mask.

    # Gumbel-softmax (tau=1, hard=False) over the N axis.
    y = logits + g_ref[...].astype(f32)
    y = y - jnp.max(y, axis=-1, keepdims=True)
    e = jnp.exp(y)
    denom = jnp.sum(e, axis=-1, keepdims=True)
    if use_approx_recip:
        attn = e * pl.reciprocal(denom, approx=True)     # EUP vrcp on TPU
    else:
        attn = e / denom                                 # portable fallback (interpret/CPU)

    # Attention-weighted values: batched MXU matmul over the N contraction,
    # then fold the per-head blocks back to (TB, hid) with a tiny H-deep reduce.
    out_full = jnp.einsum('bhn,bnd->bhd', attn, s, preferred_element_type=f32)   # (TB, H, hid)
    out = jnp.sum(out_full * sel[None, :, :], axis=1)                            # (TB, hid)
    o_ref[...] = out.astype(o_ref.dtype)


def _pick_block_b(B, N, hid):
    """Pick a B-tile: big enough to amortize per-step overhead, small enough that the
    streaming f32 working set (s tile + k_t/out_full temporaries, double-buffered)
    stays well under the default scoped VMEM limit."""
    row_bytes = 6 * 4 * N * hid                      # rough per-B-row VMEM cost
    budget_rows = max(8, (16 * 1024 * 1024) // max(row_bytes, 1))
    if B <= budget_rows:
        return B                                     # single / full-extent blocks
    tb = (budget_rows // 8) * 8                      # sublane-aligned
    while tb >= 8:
        if B % tb == 0:
            return tb
        tb -= 8
    return B


def local_layer_forward(h, s, W, bias, head_num, *, rng_key=None, gumbel_noise=None):
    """Local_Layer forward.

    h: (B, hid), s: (B, N, hid),
    W: (head_num, hd, hd) per-head nn.Linear weights in PyTorch (out, in) layout,
    bias: (head_num, hd).  Returns (B, hid).
    """
    B, hid = h.shape
    N = s.shape[1]
    hd = hid // head_num
    assert head_num * hd == hid

    # Block-diagonal weight: [in, out] block i is W[i].T  -> one matmul for all heads.
    w_bd = jax.scipy.linalg.block_diag(*[W[i].T for i in range(head_num)]).astype(h.dtype)
    b_full = bias.reshape(1, hid).astype(h.dtype)                                # (1, hid)
    # Head-selection mask (H, hid).
    sel = (jnp.arange(hid) // hd == jnp.arange(head_num)[:, None]).astype(jnp.float32)
    # Fresh standard-Gumbel noise per call (matches F.gumbel_softmax semantics).
    if gumbel_noise is None:
        gumbel_noise = jax.random.gumbel(rng_key, (B, head_num, N), dtype=jnp.float32)

    tb = _pick_block_b(B, N, hid)
    grid = (B // tb,)
    use_approx_recip = jax.default_backend() == "tpu"

    kernel = functools.partial(_local_layer_kernel, use_approx_recip=use_approx_recip)

    out = pl.pallas_call(
        kernel,
        out_shape=jax.ShapeDtypeStruct((B, hid), h.dtype),
        grid=grid,
        in_specs=[
            pl.BlockSpec((tb, hid), lambda i: (i, 0)),              # h tile
            pl.BlockSpec((tb, N, hid), lambda i: (i, 0, 0)),        # s tile (streamed)
            pl.BlockSpec((tb, head_num, N), lambda i: (i, 0, 0)),   # gumbel noise tile
            pl.BlockSpec((hid, hid), lambda i: (0, 0)),             # block-diag W (resident)
            pl.BlockSpec((1, hid), lambda i: (0, 0)),               # bias (resident)
            pl.BlockSpec((head_num, hid), lambda i: (0, 0)),        # head mask (resident)
        ],
        out_specs=pl.BlockSpec((tb, hid), lambda i: (i, 0)),        # lane-dense output
        compiler_params=pltpu.CompilerParams(
            dimension_semantics=("parallel",),                      # B tiles independent
        ),
    )(h, s, gumbel_noise, w_bd, b_full, sel)
    return out


def _reference(h, s, W, bias, head_num, gumbel):
    """Pure-JAX reference mirroring the PyTorch module (same Gumbel noise)."""
    B, hid = h.shape
    N = s.shape[1]
    hd = hid // head_num
    hh = h.reshape(B, 1, head_num, hd)
    ss = s.reshape(B, N, head_num, hd)
    hp = jax.lax.Precision.HIGHEST
    outs = []
    for idx in range(head_num):
        q = hh[:, :, idx, :]                                                   # (B, 1, hd)
        k = ss[:, :, idx, :]                                                   # (B, N, hd)
        qt = jax.nn.relu(jnp.einsum('bqd,ed->bqe', q, W[idx], precision=hp) + bias[idx])
        kt = jax.nn.relu(jnp.einsum('bnd,ed->bne', k, W[idx], precision=hp) + bias[idx])
        logits = jnp.einsum('bqe,bne->bqn', qt, kt, precision=hp)[:, 0, :]     # (B, N)
        attn = jax.nn.softmax(logits + gumbel[:, idx, :], axis=-1)             # (B, N)
        outs.append(jnp.einsum('bn,bnd->bd', attn, k, precision=hp))           # (B, hd)
    return jnp.concatenate(outs, axis=-1)                                       # (B, hid)


if __name__ == "__main__":
    B, N, hid, head_num = 2, 16, 32, 4
    hd = hid // head_num

    key = jax.random.PRNGKey(0)
    k1, k2, k3, k4, k5 = jax.random.split(key, 5)
    h = jax.random.normal(k1, (B, hid), dtype=jnp.float32)
    s = jax.random.normal(k2, (B, N, hid), dtype=jnp.float32)
    # Synthetic per-head nn.Linear(hd, hd) parameters (PyTorch (out, in) layout).
    W = jax.random.normal(k3, (head_num, hd, hd), dtype=jnp.float32) * 0.1
    bias = jax.random.normal(k4, (head_num, hd), dtype=jnp.float32) * 0.01
    gumbel = jax.random.gumbel(k5, (B, head_num, N), dtype=jnp.float32)

    out = local_layer_forward(h, s, W, bias, head_num, gumbel_noise=gumbel)
    out = jax.block_until_ready(out)
    assert out.shape == (B, hid), out.shape
    assert bool(jnp.all(jnp.isfinite(out)))

    ref = _reference(h, s, W, bias, head_num, gumbel)
    max_err = float(jnp.max(jnp.abs(out - ref)))
    assert max_err < 5e-2, f"kernel/reference mismatch: max_err={max_err}"

    print("KERNEL_OK")
</pallas_src>

<mosaic_0001>
module attributes {stable_mosaic.version = 11 : i64} {
  func.func @_local_layer_kernel(%arg0: i32, %arg1: memref<2x32xf32, #tpu.memory_space<vmem>>, %arg2: memref<2x16x32xf32, #tpu.memory_space<vmem>>, %arg3: memref<2x4x16xf32, #tpu.memory_space<vmem>>, %arg4: memref<32x32xf32, #tpu.memory_space<vmem>>, %arg5: memref<1x32xf32, #tpu.memory_space<vmem>>, %arg6: memref<4x32xf32, #tpu.memory_space<vmem>>, %arg7: memref<2x32xf32, #tpu.memory_space<vmem>>) attributes {dimension_semantics = [#tpu.dimension_semantics<parallel>], iteration_bounds = array<i64: 1>, scalar_prefetch = 0 : i64, scratch_operands = 0 : i64, tpu.core_type = #tpu.core_type<tc>, window_params = [{transform_indices = @transform_0, window_bounds = array<i64: 2, 32>}, {transform_indices = @transform_1, window_bounds = array<i64: 2, 16, 32>}, {transform_indices = @transform_2, window_bounds = array<i64: 2, 4, 16>}, {pipeline_mode = #tpu.pipeline_mode<synchronous>, transform_indices = @transform_3, window_bounds = array<i64: 32, 32>}, {pipeline_mode = #tpu.pipeline_mode<synchronous>, transform_indices = @transform_4, window_bounds = array<i64: 1, 32>}, {pipeline_mode = #tpu.pipeline_mode<synchronous>, transform_indices = @transform_5, window_bounds = array<i64: 4, 32>}, {transform_indices = @transform_6, window_bounds = array<i64: 2, 32>}]} {
    %c0 = arith.constant 0 : index
    %c0_0 = arith.constant 0 : index
    %0 = vector.load %arg1[%c0, %c0_0] : memref<2x32xf32, #tpu.memory_space<vmem>>, vector<2x32xf32>
    %c0_1 = arith.constant 0 : index
    %c0_2 = arith.constant 0 : index
    %c0_3 = arith.constant 0 : index
    %1 = vector.load %arg2[%c0_1, %c0_2, %c0_3] : memref<2x16x32xf32, #tpu.memory_space<vmem>>, vector<2x16x32xf32>
    %c0_4 = arith.constant 0 : index
    %c0_5 = arith.constant 0 : index
    %2 = vector.load %arg4[%c0_4, %c0_5] : memref<32x32xf32, #tpu.memory_space<vmem>>, vector<32x32xf32>
    %c0_6 = arith.constant 0 : index
    %c0_7 = arith.constant 0 : index
    %3 = vector.load %arg5[%c0_6, %c0_7] : memref<1x32xf32, #tpu.memory_space<vmem>>, vector<1x32xf32>
    %c0_8 = arith.constant 0 : index
    %c0_9 = arith.constant 0 : index
    %4 = vector.load %arg6[%c0_8, %c0_9] : memref<4x32xf32, #tpu.memory_space<vmem>>, vector<4x32xf32>
    %cst = arith.constant dense<0.000000e+00> : vector<2x32xf32>
    %5 = tpu.matmul %0, %2, %cst {dimension_numbers = #tpu.dot_dimension_numbers<[1], [0], [0], [1], [0, 0, 1, 1], [], []>} : vector<2x32xf32>, vector<32x32xf32>, vector<2x32xf32> -> vector<2x32xf32>
    %6 = vector.broadcast %3 : vector<1x32xf32> to vector<2x32xf32>
    %7 = arith.addf %5, %6 : vector<2x32xf32>
    %cst_10 = arith.constant 0.000000e+00 : f32
    %8 = vector.broadcast %cst_10 : f32 to vector<2x32xf32>
    %9 = arith.maximumf %7, %8 : vector<2x32xf32>
    %10 = vector.shape_cast %1 : vector<2x16x32xf32> to vector<32x32xf32>
    %cst_11 = arith.constant dense<0.000000e+00> : vector<32x32xf32>
    %11 = tpu.matmul %10, %2, %cst_11 {dimension_numbers = #tpu.dot_dimension_numbers<[1], [0], [0], [1], [0, 0, 1, 1], [], []>} : vector<32x32xf32>, vector<32x32xf32>, vector<32x32xf32> -> vector<32x32xf32>
    %12 = vector.broadcast %3 : vector<1x32xf32> to vector<32x32xf32>
    %13 = arith.addf %11, %12 : vector<32x32xf32>
    %cst_12 = arith.constant 0.000000e+00 : f32
    %14 = vector.broadcast %cst_12 : f32 to vector<32x32xf32>
    %15 = arith.maximumf %13, %14 : vector<32x32xf32>
    %16 = vector.shape_cast %15 : vector<32x32xf32> to vector<2x16x32xf32>
    %17 = vector.shape_cast %9 : vector<2x32xf32> to vector<2x1x32xf32>
    %18 = vector.shape_cast %4 : vector<4x32xf32> to vector<1x4x32xf32>
    %19 = vector.broadcast %17 : vector<2x1x32xf32> to vector<2x4x32xf32>
    %20 = vector.broadcast %18 : vector<1x4x32xf32> to vector<2x4x32xf32>
    %21 = arith.mulf %19, %20 : vector<2x4x32xf32>
    "tpu.trace_start"() <{level = 10 : i32, message = "bhd,bnd->bhn"}> : () -> ()
    %cst_13 = arith.constant dense<0.000000e+00> : vector<2x4x16xf32>
    %22 = tpu.matmul %21, %16, %cst_13 {dimension_numbers = #tpu.dot_dimension_numbers<[2], [2], [1], [1], [0, 0, 0, 1, 1, 1], [0], [0]>} : vector<2x4x32xf32>, vector<2x16x32xf32>, vector<2x4x16xf32> -> vector<2x4x16xf32>
    "tpu.trace_stop"() : () -> ()
    %c0_14 = arith.constant 0 : index
    %c0_15 = arith.constant 0 : index
    %c0_16 = arith.constant 0 : index
    %23 = vector.load %arg3[%c0_14, %c0_15, %c0_16] : memref<2x4x16xf32, #tpu.memory_space<vmem>>, vector<2x4x16xf32>
    %24 = arith.addf %22, %23 : vector<2x4x16xf32>
    %cst_17 = arith.constant dense<0xFF800000> : vector<2x4xf32>
    %25 = vector.multi_reduction <maximumf>, %24, %cst_17 [2] : vector<2x4x16xf32> to vector<2x4xf32>
    %26 = vector.shape_cast %25 : vector<2x4xf32> to vector<2x4x1xf32>
    %27 = vector.broadcast %26 : vector<2x4x1xf32> to vector<2x4x16xf32>
    %28 = arith.subf %24, %27 : vector<2x4x16xf32>
    %29 = math.exp %28 : vector<2x4x16xf32>
    %cst_18 = arith.constant dense<0.000000e+00> : vector<2x4xf32>
    %30 = vector.multi_reduction <add>, %29, %cst_18 [2] : vector<2x4x16xf32> to vector<2x4xf32>
    %31 = vector.shape_cast %30 : vector<2x4xf32> to vector<2x4x1xf32>
    %32 = vector.broadcast %31 : vector<2x4x1xf32> to vector<2x4x16xf32>
    %33 = arith.divf %29, %32 : vector<2x4x16xf32>
    "tpu.trace_start"() <{level = 10 : i32, message = "bhn,bnd->bhd"}> : () -> ()
    %cst_19 = arith.constant dense<0.000000e+00> : vector<2x4x32xf32>
    %34 = tpu.matmul %33, %1, %cst_19 {dimension_numbers = #tpu.dot_dimension_numbers<[2], [1], [1], [2], [0, 0, 0, 1, 1, 2], [0], [0]>} : vector<2x4x16xf32>, vector<2x16x32xf32>, vector<2x4x32xf32> -> vector<2x4x32xf32>
    "tpu.trace_stop"() : () -> ()
    %35 = vector.shape_cast %4 : vector<4x32xf32> to vector<1x4x32xf32>
    %36 = vector.broadcast %35 : vector<1x4x32xf32> to vector<2x4x32xf32>
    %37 = arith.mulf %34, %36 : vector<2x4x32xf32>
    %cst_20 = arith.constant dense<0.000000e+00> : vector<2x32xf32>
    %38 = vector.multi_reduction <add>, %37, %cst_20 [1] : vector<2x4x32xf32> to vector<2x32xf32>
    %c0_21 = arith.constant 0 : index
    %c0_22 = arith.constant 0 : index
    %39 = vector.load %arg7[%c0_21, %c0_22] : memref<2x32xf32, #tpu.memory_space<vmem>>, vector<2x32xf32>
    tpu.vector_store %arg7[%c0_21, %c0_22], %38 {strides = array<i32>} : memref<2x32xf32, #tpu.memory_space<vmem>>, vector<2x32xf32>,
    return
  }
  func.func @transform_0(%arg0: i32) -> (i32, i32) {
    %c0_i32 = arith.constant 0 : i32
    %c0_i32_0 = arith.constant 0 : i32
    return %arg0, %c0_i32 : i32, i32
  }
  func.func @transform_1(%arg0: i32) -> (i32, i32, i32) {
    %c0_i32 = arith.constant 0 : i32
    %c0_i32_0 = arith.constant 0 : i32
    %c0_i32_1 = arith.constant 0 : i32
    return %arg0, %c0_i32, %c0_i32_0 : i32, i32, i32
  }
  func.func @transform_2(%arg0: i32) -> (i32, i32, i32) {
    %c0_i32 = arith.constant 0 : i32
    %c0_i32_0 = arith.constant 0 : i32
    %c0_i32_1 = arith.constant 0 : i32
    return %arg0, %c0_i32, %c0_i32_0 : i32, i32, i32
  }
  func.func @transform_3(%arg0: i32) -> (i32, i32) {
    %c0_i32 = arith.constant 0 : i32
    %c0_i32_0 = arith.constant 0 : i32
    %c0_i32_1 = arith.constant 0 : i32
    return %c0_i32, %c0_i32_0 : i32, i32
  }
  func.func @transform_4(%arg0: i32) -> (i32, i32) {
    %c0_i32 = arith.constant 0 : i32
    %c0_i32_0 = arith.constant 0 : i32
    %c0_i32_1 = arith.constant 0 : i32
    return %c0_i32, %c0_i32_0 : i32, i32
  }
  func.func @transform_5(%arg0: i32) -> (i32, i32) {
    %c0_i32 = arith.constant 0 : i32
    %c0_i32_0 = arith.constant 0 : i32
    %c0_i32_1 = arith.constant 0 : i32
    return %c0_i32, %c0_i32_0 : i32, i32
  }
  func.func @transform_6(%arg0: i32) -> (i32, i32) {
    %c0_i32 = arith.constant 0 : i32
    %c0_i32_0 = arith.constant 0 : i32
    return %arg0, %c0_i32 : i32, i32
  }
}

</mosaic_0001>

<bundles_post_ra>
// kernel: tpu_custom_call.1
= control target key start
LH: loop header
LB: loop body
LE: loop exit
PB: predicated region body
PF: predicated region fallthrough
CT: control target
= control target key end

     0   :  { %11 = vsyncpa [#allocation3], 0  ;;  %s666_s0 = inlined_call_operand.hbm [shape: f32[2,32], index: 0, kind: input, shape index: {}]   ;;  %s667_s1 = inlined_call_operand.hbm [shape: f32[2,16,32], index: 1, kind: input, shape index: {}]   ;;  %s668_s2 = inlined_call_operand.hbm [shape: f32[2,4,16], index: 2, kind: input, shape index: {}]   ;;  %s669_s3 = inlined_call_operand.hbm [shape: f32[32,32], index: 3, kind: input, shape index: {}]   ;;  %s670_s4 = inlined_call_operand.hbm [shape: f32[1,32], index: 4, kind: input, shape index: {}]   ;;  %s671_s5 = inlined_call_operand.vmem [shape: f32[4,32], index: 5, kind: input, shape index: {}]   ;;  %s672_s6 = inlined_call_operand.hbm [shape: f32[2,32], index: 6, kind: output, shape index: {}]  }
   0x1   :  { %12 = vsyncpa [#allocation6], 0 }
   0x2   :  { %13 = vsyncpa [#allocation9], 0  ;;  %s30_s23 = sshll.u32 %s667_s1, 4  ;;  %s31_s23 = int_to_ptr.hbm [resolvable:$true] %s30_s23 }
   0x3   :  { %14 = vsyncpa [#allocation4], 0  ;;  %s577_s24 = smov [#allocation5]   ;;  %s56_s28 = sshll.u32 %s669_s3, 4  ;;  %s57_s28 = int_to_ptr.hbm [resolvable:$true] %s56_s28 }
   0x4   :  { %s32_s25 = sshll.u32 %s577_s24, 4  ;;  %s578_s29 = smov 128   ;;  %s33_s25 = int_to_ptr.vmem [resolvable:$true] %s32_s25 }
   0x5   :  { %s579_s30 = smov 8   ;;  %s580_s7 = smov [#allocation8]  }
   0x6   :  { %38 = dma.hbm_to_vmem [thread:$0]  %s31_s23, 512, %s33_s25, [#allocation6], %s578_s29, %s578_s29, %s579_s30  }
   0x7   :  { %s58_s8 = sshll.u32 %s580_s7, 4  ;;  %s20_s11 = sshll.u32 %s666_s0, 4  ;;  %s59_s8 = int_to_ptr.vmem [resolvable:$true] %s58_s8  ;;  %s21_s11 = int_to_ptr.hbm [resolvable:$true] %s20_s11 }
   0x8   :  { %64 = dma.hbm_to_vmem [thread:$0]  %s57_s28, 512, %s59_s8, [#allocation9], %s578_s29, %s578_s29, %s579_s30  }
   0x9   :  { %s43_s13 = sshll.u32 %s668_s2, 4  ;;  %s581_s14 = smov [#allocation2]   ;;  %s44_s13 = int_to_ptr.hbm [resolvable:$true] %s43_s13 }
   0xa   :  { %s22_s15 = sshll.u32 %s581_s14, 4  ;;  %s582_s3 = smov [#allocation7]   ;;  %s23_s15 = int_to_ptr.vmem [resolvable:$true] %s22_s15 }
   0xb   :  { %25 = dma.hbm_to_vmem [thread:$0]  %s21_s11, 32, %s23_s15, [#allocation3]  }
   0xc   :  { %s45_s16 = sshll.u32 %s582_s3, 4  ;;  %s583_s17 = smov 64   ;;  %s46_s16 = int_to_ptr.vmem [resolvable:$true] %s45_s16 }
   0xd   :  { %s584_s18 = smov 4   ;;  %s70_s20 = sshll.u32 %s670_s4, 4  ;;  %s71_s20 = int_to_ptr.hbm [resolvable:$true] %s70_s20 }
   0xe   :  { %51 = dma.hbm_to_vmem [thread:$0]  %s44_s13, 128, %s46_s16, [#allocation6], %s583_s17, %s583_s17, %s584_s18  }
   0xf   :  { %s585_s21 = smov [#allocation10]  }
  0x10   :  { %s72_s22 = sshll.u32 %s585_s21, 4  ;;  %s73_s22 = int_to_ptr.vmem [resolvable:$true] %s72_s22 }
  0x11   :  { %75 = dma.hbm_to_vmem [thread:$0]  %s71_s20, 16, %s73_s22, [#allocation9]  }
  0x12   :  { %569 = dma.done.wait [#allocation3], 32  }
  0x13   :  { %570 = vsyncadd [#allocation3], 4294967264 }
  0x14   :  { %571 = dma.done.wait [#allocation6], 640  }
  0x15   :  { %572 = vsyncadd [#allocation6], 4294966656 }
  0x16   :  { %573 = dma.done.wait [#allocation9], 528  }
  0x17   :  { %574 = vsyncadd [#allocation9], 4294966768  ;;  %v106_v0 = vld [vmem:[#allocation8 + $0x18] sm:$0xff]  ;;  %v105_v1 = vld [vmem:[#allocation8 + $0x10] sm:$0xff]  ;;  %vm112_vm0 = vcmask 261120   ;;  %vm250_vm1 = vcmask 125952  }
  0x18   :  { %161 = vmatpush.msra.mxu1 %v106_v0  ;;  %402 = vmatpush.msra.mxu3 %v106_v0  ;;  %v104_v2 = vld [vmem:[#allocation8 + $0x8] sm:$0xff]  ;;  %v103_v3 = vld [vmem:[#allocation8] sm:$0xff]  ;;  %v99_v4 = vld [vmem:[#allocation5] sm:$0xff]  ;;  %vm299_vm6 = vcmask 130048   ;;  %vm348_vm11 = vcmask 257024   ;;  %s377_s26 = sshll.u32 %s672_s6, 4  ;;  %s378_s26 = int_to_ptr.hbm [resolvable:$true] %s377_s26 }
  0x19   :  { %128 = vmatpush.msra.mxu0 %v106_v0  ;;  %v102_v5 = vld [vmem:[#allocation5 + $0x18] sm:$0xff]  ;;  %v100_v7 = vld [vmem:[#allocation5 + $0x8] sm:$0xff]  ;;  %v101_v8 = vld [vmem:[#allocation5 + $0x10] sm:$0xff]  ;;  %vm365_vm12 = vcmask 1041409   ;;  %vm368_vm13 = vcmask 254976  }
  0x1a   :  { %162 = vmatpush.msra.mxu1 %v105_v1  ;;  %403 = vmatpush.msra.mxu3 %v105_v1  ;;  %v98_v6 = vld [vmem:[#allocation2] sm:$0x3]  ;;  %v416_v10 = vld [vmem:[#allocation10] ss:$0 sm:$0xff]  ;;  %v191_v31 = vld [vmem:[#allocation7 + $0x4] sm:$0xf] }
  0x1b   :  { %129 = vmatpush.msra.mxu0 %v105_v1  ;;  %v646_v23 = vld [vmem:[%s671_s5] sm:$0xf]  ;;  %s586_s5 = smov [#allocation11]  }
  0x1c   :  { %163 = vmatpush.msra.mxu1 %v104_v2  ;;  %404 = vmatpush.msra.mxu3 %v104_v2  ;;  %v190_v35 = vld [vmem:[#allocation7] sm:$0xf]  ;;  %s375_s23 = sshll.u32 %s586_s5, 4  ;;  %s376_s23 = int_to_ptr.vmem [resolvable:$true] %s375_s23 }
  0x1d   :  { %130 = vmatpush.msra.mxu0 %v104_v2 }
  0x1e   :  { %164 = vmatpush.msra.mxu1 %v103_v3  ;;  %405 = vmatpush.msra.mxu3 %v103_v3 }
  0x1f   :  { %390 = vmatmul.msk.f32.vlgmr.msra.gmra.mxu1 %vm112_vm0, %v99_v4  ;;  %393 = vmatmul.msk.f32.vlgmr.msra.gmra.mxu3 %vm112_vm0, %v102_v5 }
  0x20   :  { %131 = vmatpush.msra.mxu0 %v103_v3 }
  0x21   :  { %389 = vmatmul.msk.f32.vlgmr.msra.gmra.mxu0 %vm112_vm0, %v98_v6 }
  0x22   :  { %317 = vmatpush.msrb.mxu0 %v100_v7 }
  0x24   :  { %318 = vmatpush.msrb.mxu0 %v99_v4 }
  0x27   :  { %391 = vmatmul.msk.f32.gmra.mxu1 %vm112_vm0, %v100_v7 }
  0x2f   :  { %392 = vmatmul.msk.f32.gmra.mxu1 %vm112_vm0, %v101_v8 }
  0x9c   :  { %v166_v9 = vpop.f32.mrf.mxu1 }
  0x9d   :  { %v167_v19 = vadd.f32 %v416_v10, %v166_v9 }
  0x9e   :  { %v133_v11 = vpop.f32.mrf.mxu0 }
  0x9f   :  { %v134_v12 = vadd.f32 %v416_v10, %v133_v11  ;;  %v178_v24 = vmax.f32 %v167_v19, 0.0 }
  0xa1   :  { %v136_v16 = vmax.f32 %v134_v12, 0.0 }
  0xa2   :  { %v175_v13 = vpop.f32.mrf.mxu3 }
  0xa3   :  { %v176_v14 = vadd.f32 %v416_v10, %v175_v13  ;;  %v183_v21 = vrot.slane %v136_v16, 1  ;;  %v184_v22 = vperm.slane %v136_v16, 0 }
  0xa4   :  { %v169_v15 = vpop.f32.mrf.mxu1 }
  0xa5   :  { %v170_v17 = vadd.f32 %v416_v10, %v169_v15  ;;  %v181_v18 = vmax.f32 %v176_v14, 0.0  ;;  %v185_v25 = vperm.slane %v183_v21, 0  ;;  %v188_v27 = vmul.f32 %v184_v22, %v646_v23 }
  0xa7   :  { %v179_v20 = vmax.f32 %v170_v17, 0.0  ;;  %397 = vmatpush.xpose.msk.msrb.mxu3 %vm112_vm0, %v181_v18  ;;  %v189_v30 = vmul.f32 %v185_v25, %v646_v23 }
  0xa9   :  { %394 = vmatpush.xpose.msk.msra.mxu2 %vm112_vm0, %v179_v20 }
  0xac   :  { %v172_v26 = vpop.f32.mrf.mxu1 }
  0xad   :  { %v173_v28 = vadd.f32 %v416_v10, %v172_v26  ;;  %395 = vmatpush.xpose.msk.msra.mxu2 %vm112_vm0, %v178_v24 }
  0xaf   :  { %v180_v29 = vmax.f32 %v173_v28, 0.0 }
  0xb0   :  { %396 = vmatmul.msk.f32.vlgmr.msra.gmra.mxu2 %vm112_vm0, %v188_v27 }
  0xb1   :  { %340 = vmatpush.msrb.mxu2 %v102_v5  ;;  %398 = vmatpush.xpose.msk.msrb.mxu3 %vm112_vm0, %v180_v29 }
  0xb3   :  { %341 = vmatpush.msrb.mxu2 %v101_v8 }
  0xb4   :  { %399 = vmatmul.msk.f32.vlgmr.msrb.gmra.mxu3 %vm112_vm0, %v189_v30 }
 0x133   :  { %v218_v36 = vpop.f32.mrf.mxu2 }
 0x134   :  { %v219_v37 = vadd.f32 %v218_v36, %v190_v35 }
 0x136   :  { %v251_v38 = vsel %vm250_vm1, %v219_v37, -inf }
 0x137   :  { %v247_v32 = vpop.f32.mrf.mxu3 }
 0x138   :  { %v248_v33 = vadd.f32 %v247_v32, %v191_v31 }
 0x13a   :  { %v254_v34 = vsel %vm250_vm1, %v248_v33, -inf }
 0x13b   :  { %255 = vmax.xlane.f32.xlu0 %v254_v34 }
 0x143   :  { %252 = vmax.xlane.f32.xlu0 %v251_v38 }
 0x1ae   :  { %v256_v39 = vpop.xlane.xlu0 %255 }
 0x1af   :  { %v258_v40 = vsub.f32 %v248_v33, %v256_v39 }
 0x1b1   :  { %v261_v41 = vmul.f32 1.442695, %v258_v40 }
 0x1b3   :  { %417 = vpow2.f32 %v261_v41 }
 0x1b6   :  { %v253_v42 = vpop.xlane.xlu0 %252 }
 0x1b7   :  { %v257_v43 = vsub.f32 %v219_v37, %v253_v42 }
 0x1b9   :  { %v418_v44 = vpop.eup %417  ;;  %v259_v45 = vmul.f32 1.442695, %v257_v43 }
 0x1ba   :  { %v266_v46 = vsel %vm250_vm1, %v418_v44, 0.0 }
 0x1bb   :  { %419 = vpow2.f32 %v259_v45  ;;  %267 = vadd.xlane.f32.xlu1 %v266_v46 }
 0x1c1   :  { %v420_v47 = vpop.eup %419 }
 0x1c2   :  { %v263_v48 = vsel %vm250_vm1, %v420_v47, 0.0 }
 0x1c3   :  { %264 = vadd.xlane.f32.xlu1 %v263_v48 }
 0x22e   :  { %v268_v49 = vpop.xlane.xlu1 %267 }
 0x22f   :  { %421 = vrcp.f32 %v268_v49  ;;  %v295_v54 = vand.u32 2147483648, %v268_v49  ;;  %v293_v56 = vand.u32 2147483647, %v268_v49  ;;  %vm289_vm3 = vweird.f32 %v268_v49 }
 0x231   :  { %v296_v59 = vor.u32 1.1754944e-38, %v295_v54  ;;  %vm294_vm5 = vcmp.eq.f32.partialorder %v293_v56, 8.507059e+37 }
 0x235   :  { %v422_v50 = vpop.eup %421 }
 0x236   :  { %v285_v51 = vmul.f32 %v422_v50, %v268_v49  ;;  %v265_v52 = vpop.xlane.xlu1 %264  ;;  %vm290_vm2 = vweird.f32 %v422_v50 }
 0x237   :  { %423 = vrcp.f32 %v265_v52  ;;  %vm291_vm4 = vmor %vm289_vm3, %vm290_vm2  ;;  %v280_v1 = vand.u32 2147483648, %v265_v52  ;;  %v278_v3 = vand.u32 2147483647, %v265_v52  ;;  %vm274_vm8 = vweird.f32 %v265_v52 }
 0x238   :  { %v286_v53 = vsub.f32 1.0, %v285_v51 }
 0x239   :  { %v281_v5 = vor.u32 1.1754944e-38, %v280_v1  ;;  %vm279_vm10 = vcmp.eq.f32.partialorder %v278_v3, 8.507059e+37 }
 0x23a   :  { %v287_v55 = vmul.f32 %v422_v50, %v286_v53 }
 0x23c   :  { %v288_v57 = vadd.f32 %v422_v50, %v287_v55 }
 0x23d   :  { %v424_v58 = vpop.eup %423 }
 0x23e   :  { %v270_v60 = vmul.f32 %v424_v58, %v265_v52  ;;  %v292_v61 = vsel %vm291_vm4, %v422_v50, %v288_v57  ;;  %vm275_vm7 = vweird.f32 %v424_v58 }
 0x23f   :  { %v297_v62 = vsel %vm294_vm5, %v296_v59, %v292_v61  ;;  %vm276_vm9 = vmor %vm274_vm8, %vm275_vm7 }
 0x240   :  { %v271_v63 = vsub.f32 1.0, %v270_v60  ;;  %v298_v0 = vmul.f32 %v418_v44, %v297_v62 }
 0x242   :  { %v272_v2 = vmul.f32 %v424_v58, %v271_v63  ;;  %401 = vmatmul.msk.f32.vlgmr.msrb.gmra.mxu2 %vm299_vm6, %v298_v0 }
 0x244   :  { %v273_v4 = vadd.f32 %v424_v58, %v272_v2 }
 0x246   :  { %v277_v6 = vsel %vm276_vm9, %v424_v58, %v273_v4 }
 0x247   :  { %v282_v7 = vsel %vm279_vm10, %v281_v5, %v277_v6 }
 0x248   :  { %v283_v8 = vmul.f32 %v420_v47, %v282_v7 }
 0x24a   :  { %400 = vmatmul.msk.f32.vlgmr.msrb.gmra.mxu0 %vm299_vm6, %v283_v8 }
 0x2c5   :  { %v343_v9 = vpop.f32.mrf.mxu2 }
 0x2c6   :  { %v347_v10 = vmul.f32 %v343_v9, %v646_v23 }
 0x2c7   :  { %v320_v11 = vpop.f32.mrf.mxu0 }
 0x2c8   :  { %v356_v12 = vsel %vm348_vm11, %v347_v10, 0.0  ;;  %v346_v13 = vmul.f32 %v320_v11, %v646_v23 }
 0x2c9   :  { %v357_v14 = vrot.slane %v356_v12, 4 }
 0x2ca   :  { %v349_v15 = vsel %vm348_vm11, %v346_v13, 0.0 }
 0x2cb   :  { %v358_v16 = vadd.f32 %v357_v14, %v356_v12  ;;  %v350_v17 = vrot.slane %v349_v15, 4 }
 0x2cd   :  { %v359_v18 = vrot.slane %v358_v16, 2  ;;  %v351_v19 = vadd.f32 %v350_v17, %v349_v15 }
 0x2cf   :  { %v360_v20 = vadd.f32 %v359_v18, %v358_v16  ;;  %v352_v21 = vrot.slane %v351_v19, 2 }
 0x2d1   :  { %v361_v22 = vrot.slane %v360_v20, 1  ;;  %v353_v24 = vadd.f32 %v352_v21, %v351_v19 }
 0x2d3   :  { %v354_v25 = vrot.slane %v353_v24, 1  ;;  %v362_v26 = vadd.f32 %v361_v22, %v360_v20 }
 0x2d5   :  { %v355_v23 = vadd.f32 %v354_v25, %v353_v24 }
 0x2d7   :  { %v366_v27 = vsel %vm365_vm12, %v362_v26, %v355_v23 }
 0x2d8   :  { %369 = vst.msk [vmem:[#allocation11] sm:$0x3] %vm368_vm13, %v366_v27 }
 0x2d9   :  { %380 = dma.vmem_to_hbm [thread:$0]  %s376_s23, 32, %s378_s26, [#allocation4]  }
 0x2da   :  { %575 = dma.done.wait [#allocation4], 32  }
 0x2db   :  { %576 = vsyncadd [#allocation4], 4294967264 }
 0x2dc   :  { %385 = vsyncpa [#allocation3], 1 }
 0x2dd   :  { %386 = vsyncpa [#allocation6], 1 }
 0x2de   :  { %387 = vsyncpa [#allocation9], 1 }
 0x2df   :  { %388 = vsyncpa [#allocation4], 1 }

</bundles_post_ra>
